<compile_context>
chip_gen: v7x
topology: tpu7x:2x2x1
jax: 0.10.0
libtpu: 0.0.40
codegen_flags: <defaults>
</compile_context>

<pallas_src>
import functools
import math

import jax
import jax.numpy as jnp
from jax.experimental import pallas as pl
from jax.experimental.pallas import tpu as pltpu


# -----------------------------------------------------------------------------
# Pallas kernel: the elementwise fake-quant hot path
# -----------------------------------------------------------------------------
def _adaround_kernel(w_ref, s_ref, zp_ref, h_ref, o_ref, *,
                     gamma, zeta, quant_min, quant_max, hard_round):
    w = w_ref[...].astype(jnp.float32)     # (bm, bn), upcast from I/O dtype
    h = h_ref[...].astype(jnp.float32)     # (bm, bn)
    s = s_ref[...]                         # (bm, 1) f32 -> broadcast over lanes
    zp = zp_ref[...]                       # (bm, 1) f32

    # Ragged edge blocks may read undefined rows of the scale column; those
    # output rows are masked on the store, but guard the divisor so no
    # div-by-0 / inf / NaN ever enters the datapath.  Valid scales are clipped
    # to >= 1e-10, so this is a no-op for real rows.
    s = jnp.where(s == 0.0, 1.0, s)

    if hard_round:
        # round(clip(sigmoid(h)*(zeta-gamma)+gamma, 0, 1)) is monotone in h, so
        # it collapses to a single VPU compare against
        # t = logit((0.5 - gamma) / (zeta - gamma)); no exp / reciprocal needed.
        # (Tie at exactly 0.5 resolves to 1 vs torch.round's half-to-even;
        # measure-zero event for real-valued hidden.)
        thresh = math.log((0.5 - gamma) / (zeta - 0.5))
        hs = jnp.where(h >= thresh, 1.0, 0.0)
    else:
        # rectified sigmoid: clip(sigmoid(v) * (zeta - gamma) + gamma, 0, 1)
        hs = jnp.clip(jax.nn.sigmoid(h) * (zeta - gamma) + gamma, 0.0, 1.0)

    # Exact divide: matches the reference floor(weight / scale) exactly (no
    # reciprocal round-off flipping a floor bucket); cheap under HBM roofline.
    q = jnp.floor(w / s) + zp + hs
    q = jnp.clip(q, float(quant_min), float(quant_max))
    o_ref[...] = (s * (q - zp)).astype(o_ref.dtype)


# -----------------------------------------------------------------------------
# Wrapper: lane-dense 2-D tiled grid, no padding, dtype-preserving I/O
# -----------------------------------------------------------------------------
def _pick_block(dim, want, align):
    """Largest legal block <= want: the full dim if it fits (always legal),
    else a multiple of `align` (ragged edge handled by Pallas)."""
    if dim <= want:
        return dim
    blk = (min(want, dim) // align) * align
    return max(blk, align)


def adaround_fake_quant(weight, scale_col, zp_col, hidden, *,
                        quant_min, quant_max, gamma=-0.1, zeta=1.1,
                        hard_round=False, block_m=512, block_n=1024):
    """weight: (O, ...) f32/bf16; scale_col/zp_col: (O,) or (O,1); hidden: same
    shape (and typically same dtype) as weight.  Output dtype == weight dtype."""
    orig_shape = weight.shape
    O = weight.shape[0]
    K = int(weight.size // O) if weight.ndim > 1 else 1

    w2 = weight.reshape(O, K)              # native dtype in HBM (bf16 OK)
    h2 = hidden.reshape(O, K)
    s2 = scale_col.reshape(O, 1).astype(jnp.float32)
    z2 = zp_col.reshape(O, 1).astype(jnp.float32)

    # Sublane alignment: 16 for packed sub-32-bit dtypes, else 8; lanes 128.
    w_item = jnp.dtype(w2.dtype).itemsize
    h_item = jnp.dtype(h2.dtype).itemsize
    sub = 16 if min(w_item, h_item) < 4 else 8
    bm = _pick_block(O, block_m, sub)
    bn = _pick_block(K, block_n, 128)
    grid = (pl.cdiv(O, bm), pl.cdiv(K, bn))

    # VMEM budget: double-buffered (w + hidden + out) tiles + tiny columns.
    o_item = w_item
    est = 2 * (bm * bn * (w_item + h_item + o_item) + 2 * bm * 4)
    # v5e scoped default is only 16 MiB -> raise; cap at v7x's 64 MiB physical.
    vmem_limit = int(min(max(2 * est, 32 << 20), 64 << 20))

    kernel = functools.partial(
        _adaround_kernel,
        gamma=float(gamma), zeta=float(zeta),
        quant_min=int(quant_min), quant_max=int(quant_max),
        hard_round=bool(hard_round),
    )

    out2 = pl.pallas_call(
        kernel,
        out_shape=jax.ShapeDtypeStruct((O, K), w2.dtype),
        grid_spec=pl.GridSpec(
            grid=grid,
            in_specs=[
                pl.BlockSpec((bm, bn), lambda i, j: (i, j)),   # weight tile
                pl.BlockSpec((bm, 1), lambda i, j: (i, 0)),    # scale column (constant over j)
                pl.BlockSpec((bm, 1), lambda i, j: (i, 0)),    # zero_point column
                pl.BlockSpec((bm, bn), lambda i, j: (i, j)),   # hidden tile
            ],
            out_specs=pl.BlockSpec((bm, bn), lambda i, j: (i, j)),
        ),
        compiler_params=pltpu.CompilerParams(
            dimension_semantics=("parallel", "parallel"),
            vmem_limit_bytes=vmem_limit),
    )(w2, s2, z2, h2)

    return out2.reshape(orig_shape)


# -----------------------------------------------------------------------------
# Parameter construction (mirrors AdaRoundFakeQuant.__init__), plain JAX glue
# -----------------------------------------------------------------------------
def init_adaround_params(weight, quant_min, quant_max, gamma=-0.1, zeta=1.1):
    O = weight.shape[0]
    wf = weight.astype(jnp.float32)
    wflat = wf.reshape(O, -1)

    # Per-output-channel asymmetric qparams (deterministic from the weight).
    w_min = jnp.minimum(wflat.min(axis=1), 0.0)
    w_max = jnp.maximum(wflat.max(axis=1), 0.0)
    scale = (w_max - w_min) / float(quant_max - quant_min)
    scale = jnp.clip(scale, 1e-10, None)                       # scale.clip(1e-10)
    max_zp = int(quant_max - quant_min)
    zero_point = jnp.clip(jnp.round(-w_min / scale), 0.0, float(max_zp))

    # _expand_qparams: kept as (O, 1) columns for the 2-D slab.
    scale_col = scale.reshape(O, 1).astype(jnp.float32)
    zp_col = zero_point.reshape(O, 1).astype(jnp.float32)

    # _init_v: hidden = -log((zeta - gamma) / (bound - gamma) - 1)
    scale_full = scale.reshape((O,) + (1,) * (weight.ndim - 1))
    wr = wf / scale_full
    bound = wr - jnp.floor(wr)
    hidden = -jnp.log((zeta - gamma) / (bound - gamma) - 1.0)

    # Hidden streams in the weight's dtype (bf16 weight -> bf16 hidden I/O).
    return scale_col, zp_col, hidden.astype(weight.dtype)


# -----------------------------------------------------------------------------
# Pure-JAX reference (mirrors the PyTorch forward)
# -----------------------------------------------------------------------------
def adaround_ref(weight, scale_col, zp_col, hidden, *,
                 quant_min, quant_max, gamma, zeta, hard_round=False):
    O = weight.shape[0]
    bshape = (O,) + (1,) * (weight.ndim - 1)
    w = weight.astype(jnp.float32)
    h = hidden.astype(jnp.float32)
    s = scale_col.reshape(bshape)
    zp = zp_col.reshape(bshape)
    hs = jnp.clip(jax.nn.sigmoid(h) * (zeta - gamma) + gamma, 0.0, 1.0)
    if hard_round:
        hs = jnp.round(hs)
    q = jnp.floor(w / s) + zp + hs
    q = jnp.clip(q, float(quant_min), float(quant_max))
    return (s * (q - zp)).astype(weight.dtype)


def _run_case(weight, quant_min, quant_max, gamma, zeta, hard_round,
              atol=1e-5, rtol=1e-5, **blocks):
    scale_col, zp_col, hidden = init_adaround_params(
        weight, quant_min, quant_max, gamma, zeta)
    out = jax.block_until_ready(adaround_fake_quant(
        weight, scale_col, zp_col, hidden,
        quant_min=quant_min, quant_max=quant_max,
        gamma=gamma, zeta=zeta, hard_round=hard_round, **blocks))
    ref = adaround_ref(
        weight, scale_col, zp_col, hidden,
        quant_min=quant_min, quant_max=quant_max,
        gamma=gamma, zeta=zeta, hard_round=hard_round)
    assert out.shape == weight.shape and out.dtype == weight.dtype
    err = jnp.max(jnp.abs(out.astype(jnp.float32) - ref.astype(jnp.float32)))
    assert jnp.allclose(out.astype(jnp.float32), ref.astype(jnp.float32),
                        atol=atol, rtol=rtol), float(err)


if __name__ == "__main__":
    key = jax.random.PRNGKey(0)
    gamma, zeta = -0.1, 1.1
    k1, k2, k3 = jax.random.split(key, 3)

    # Case 1: small conv-like OIHW weight (8, 4, 3, 3) -> slab (8, 36),
    # single full-extent block.  4-bit unsigned affine range.
    w_a = jax.random.normal(k1, (8, 4, 3, 3), dtype=jnp.float32) * 0.5
    _run_case(w_a, 0, 15, gamma, zeta, hard_round=False)
    _run_case(w_a, 0, 15, gamma, zeta, hard_round=True)

    # Case 2: ragged multi-block grid with NO wrapper padding:
    # (24, 5, 6, 6) -> slab (24, 180), blocks (16, 128) -> grid (2, 2) with
    # masked edge blocks in both dims; per-row scale reused across K tiles.
    w_b = jax.random.normal(k2, (24, 5, 6, 6), dtype=jnp.float32) * 0.25
    _run_case(w_b, 0, 15, gamma, zeta, hard_round=False, block_m=16, block_n=128)
    _run_case(w_b, 0, 15, gamma, zeta, hard_round=True, block_m=16, block_n=128)

    # Case 3: bf16 weight/hidden I/O (f32 compute in-kernel), signed 4-bit range.
    w_c = (jax.random.normal(k3, (16, 8, 3, 3), dtype=jnp.float32) * 0.5
           ).astype(jnp.bfloat16)
    _run_case(w_c, -8, 7, gamma, zeta, hard_round=False, atol=2e-2, rtol=2e-2)
    _run_case(w_c, -8, 7, gamma, zeta, hard_round=True, atol=2e-2, rtol=2e-2)

    print("KERNEL_OK")
</pallas_src>

<mosaic_0001>
module attributes {stable_mosaic.version = 11 : i64} {
  func.func @_adaround_kernel(%arg0: i32, %arg1: i32, %arg2: memref<8x36xf32, #tpu.memory_space<vmem>>, %arg3: memref<8x1xf32, #tpu.memory_space<vmem>>, %arg4: memref<8x1xf32, #tpu.memory_space<vmem>>, %arg5: memref<8x36xf32, #tpu.memory_space<vmem>>, %arg6: memref<8x36xf32, #tpu.memory_space<vmem>>) attributes {dimension_semantics = [#tpu.dimension_semantics<parallel>, #tpu.dimension_semantics<parallel>], iteration_bounds = array<i64: 1, 1>, scalar_prefetch = 0 : i64, scratch_operands = 0 : i64, tpu.core_type = #tpu.core_type<tc>, window_params = [{transform_indices = @transform_0, window_bounds = array<i64: 8, 36>}, {transform_indices = @transform_1, window_bounds = array<i64: 8, 1>}, {transform_indices = @transform_2, window_bounds = array<i64: 8, 1>}, {transform_indices = @transform_3, window_bounds = array<i64: 8, 36>}, {transform_indices = @transform_4, window_bounds = array<i64: 8, 36>}]} {
    %c0 = arith.constant 0 : index
    %c0_0 = arith.constant 0 : index
    %0 = vector.load %arg2[%c0, %c0_0] : memref<8x36xf32, #tpu.memory_space<vmem>>, vector<8x36xf32>
    %c0_1 = arith.constant 0 : index
    %c0_2 = arith.constant 0 : index
    %1 = vector.load %arg5[%c0_1, %c0_2] : memref<8x36xf32, #tpu.memory_space<vmem>>, vector<8x36xf32>
    %c0_3 = arith.constant 0 : index
    %c0_4 = arith.constant 0 : index
    %2 = vector.load %arg3[%c0_3, %c0_4] : memref<8x1xf32, #tpu.memory_space<vmem>>, vector<8x1xf32>
    %c0_5 = arith.constant 0 : index
    %c0_6 = arith.constant 0 : index
    %3 = vector.load %arg4[%c0_5, %c0_6] : memref<8x1xf32, #tpu.memory_space<vmem>>, vector<8x1xf32>
    %cst = arith.constant 0.000000e+00 : f32
    %4 = vector.broadcast %cst : f32 to vector<8x1xf32>
    %5 = arith.cmpf oeq, %2, %4 : vector<8x1xf32>
    %cst_7 = arith.constant 1.000000e+00 : f32
    %6 = vector.broadcast %cst_7 : f32 to vector<8x1xf32>
    %7 = arith.select %5, %6, %2 : vector<8x1xi1>, vector<8x1xf32>
    %8 = arith.negf %1 : vector<8x36xf32>
    %9 = math.exp %8 : vector<8x36xf32>
    %cst_8 = arith.constant 1.000000e+00 : f32
    %10 = vector.broadcast %cst_8 : f32 to vector<8x36xf32>
    %11 = arith.addf %10, %9 : vector<8x36xf32>
    %12 = arith.divf %10, %11 : vector<8x36xf32>
    %cst_9 = arith.constant 1.200000e+00 : f32
    %13 = vector.broadcast %cst_9 : f32 to vector<8x36xf32>
    %14 = arith.mulf %12, %13 : vector<8x36xf32>
    %cst_10 = arith.constant -1.000000e-01 : f32
    %15 = vector.broadcast %cst_10 : f32 to vector<8x36xf32>
    %16 = arith.addf %14, %15 : vector<8x36xf32>
    %cst_11 = arith.constant 0.000000e+00 : f32
    %cst_12 = arith.constant 1.000000e+00 : f32
    %17 = vector.broadcast %cst_11 : f32 to vector<8x36xf32>
    %18 = arith.maximumf %17, %16 : vector<8x36xf32>
    %19 = vector.broadcast %cst_12 : f32 to vector<8x36xf32>
    %20 = arith.minimumf %19, %18 : vector<8x36xf32>
    %21 = vector.broadcast %7 : vector<8x1xf32> to vector<8x36xf32>
    %22 = arith.divf %0, %21 : vector<8x36xf32>
    %23 = math.floor %22 : vector<8x36xf32>
    %24 = vector.broadcast %3 : vector<8x1xf32> to vector<8x36xf32>
    %25 = arith.addf %23, %24 : vector<8x36xf32>
    %26 = arith.addf %25, %20 : vector<8x36xf32>
    %cst_13 = arith.constant 0.000000e+00 : f32
    %cst_14 = arith.constant 1.500000e+01 : f32
    %27 = vector.broadcast %cst_13 : f32 to vector<8x36xf32>
    %28 = arith.maximumf %27, %26 : vector<8x36xf32>
    %29 = vector.broadcast %cst_14 : f32 to vector<8x36xf32>
    %30 = arith.minimumf %29, %28 : vector<8x36xf32>
    %31 = vector.broadcast %3 : vector<8x1xf32> to vector<8x36xf32>
    %32 = arith.subf %30, %31 : vector<8x36xf32>
    %33 = vector.broadcast %7 : vector<8x1xf32> to vector<8x36xf32>
    %34 = arith.mulf %33, %32 : vector<8x36xf32>
    %c0_15 = arith.constant 0 : index
    %c0_16 = arith.constant 0 : index
    %35 = vector.load %arg6[%c0_15, %c0_16] : memref<8x36xf32, #tpu.memory_space<vmem>>, vector<8x36xf32>
    tpu.vector_store %arg6[%c0_15, %c0_16], %34 {strides = array<i32>} : memref<8x36xf32, #tpu.memory_space<vmem>>, vector<8x36xf32>,
    return
  }
  func.func @transform_0(%arg0: i32, %arg1: i32) -> (i32, i32) {
    %c0_i32 = arith.constant 0 : i32
    return %arg0, %arg1 : i32, i32
  }
  func.func @transform_1(%arg0: i32, %arg1: i32) -> (i32, i32) {
    %c0_i32 = arith.constant 0 : i32
    %c0_i32_0 = arith.constant 0 : i32
    return %arg0, %c0_i32 : i32, i32
  }
  func.func @transform_2(%arg0: i32, %arg1: i32) -> (i32, i32) {
    %c0_i32 = arith.constant 0 : i32
    %c0_i32_0 = arith.constant 0 : i32
    return %arg0, %c0_i32 : i32, i32
  }
  func.func @transform_3(%arg0: i32, %arg1: i32) -> (i32, i32) {
    %c0_i32 = arith.constant 0 : i32
    return %arg0, %arg1 : i32, i32
  }
  func.func @transform_4(%arg0: i32, %arg1: i32) -> (i32, i32) {
    %c0_i32 = arith.constant 0 : i32
    return %arg0, %arg1 : i32, i32
  }
}

</mosaic_0001>

<bundles_post_ra>
// kernel: tpu_custom_call.1
= control target key start
LH: loop header
LB: loop body
LE: loop exit
PB: predicated region body
PF: predicated region fallthrough
CT: control target
= control target key end

     0   :  { %v103_v1 = vmov 0   ;;  %s154_s0 = inlined_call_operand.vmem [shape: f32[8,36], index: 0, kind: input, shape index: {}]   ;;  %s155_s1 = inlined_call_operand.vmem [shape: f32[8,1], index: 1, kind: input, shape index: {}]   ;;  %s156_s2 = inlined_call_operand.vmem [shape: f32[8,1], index: 2, kind: input, shape index: {}]   ;;  %s157_s3 = inlined_call_operand.vmem [shape: f32[8,36], index: 3, kind: input, shape index: {}]   ;;  %s158_s4 = inlined_call_operand.hbm [shape: f32[8,36], index: 4, kind: output, shape index: {}]  }
   0x1   :  { %v20_v0 = vld [vmem:[%s155_s1] sm:$0xff]  ;;  %72 = vset.pattern.permute.xlu0 %v103_v1 }
   0x2   :  { %vm22_vm0 = vcmp.eq.f32.partialorder %v20_v0, 0.0 }
   0x3   :  { %9 = vsyncpa [#allocation3], 0  ;;  %v23_v2 = vsel %vm22_vm0, 1.0, %v20_v0  ;;  %v21_v3 = vld [vmem:[%s156_s2] sm:$0xff]  ;;  %s104_s2 = smov [#allocation2]   ;;  %vm53_vm1 = vcmask 293888  }
   0x4   :  { %36 = vperm.xlu0 %72, %v23_v2   ;;  %v19_v4 = vld [vmem:[%s157_s3] sm:$0xff]  ;;  %s61_s3 = sshll.u32 %s104_s2, 4  ;;  %s62_s3 = int_to_ptr.vmem [resolvable:$true] %s61_s3 }
   0x5   :  { %v69_v5 = vmul.f32 -1.442695, %v19_v4  ;;  %v18_v12 = vld [vmem:[%s154_s0] sm:$0xff]  ;;  %s79_s22 = scalar_lea.vmem %s62_s3, 128  ;;  %p84_p1 = scmp.lt.s32.totalorder %s62_s3, %s62_s3 }
   0x6   :  { %p80_p0 = scmp.ne.s32.totalorder %s62_s3, %s79_s22  ;;  %p85_p2 = scmp.lt.s32.totalorder %s79_s22, %s79_s22 }
   0x7   :  { %73 = vpow2.f32 %v69_v5 }
   0x8   :  { %44 = vperm.xlu0 %72, %v21_v3   ;;  %p86_p3 = por %p85_p2, %p84_p1 }
   0xa   :  { %p87_p4 = pnand %p86_p3, %p80_p0 }
  0x11   :  { %v74_v6 = vpop.eup %73 }
  0x12   :  { %v27_v7 = vadd.f32 1.0, %v74_v6 }
  0x14   :  { %75 = vrcp.f32 %v27_v7 }
  0x1e   :  { %v76_v8 = vpop.eup %75 }
  0x1f   :  { %v30_v10 = vmul.f32 1.2, %v76_v8 }
  0x21   :  { %v31_v11 = vadd.f32 -0.1, %v30_v10 }
  0x23   :  { %v32_v13 = vmax.f32 %v31_v11, 0.0 }
  0x25   :  { %v33_v16 = vmin.f32 %v32_v13, 1.0 }
  0x83   :  { %v37_v9 = vpop.permute.xlu0 %36 }
  0x84   :  { %77 = vrcp.f32 %v37_v9 }
  0x87   :  { %v45_v18 = vpop.permute.xlu0 %44 }
  0x8e   :  { %v78_v14 = vpop.eup %77 }
  0x8f   :  { %v40_v15 = vmul.f32 %v78_v14, %v18_v12 }
  0x91   :  { %v41_v17 = vfloor.f32 %v40_v15 }
  0x93   :  { %v47_v19 = vadd.f32 %v45_v18, %v41_v17 }
  0x95   :  { %v48_v20 = vadd.f32 %v47_v19, %v33_v16 }
  0x97   :  { %v49_v21 = vmax.f32 %v48_v20, 0.0 }
  0x99   :  { %v50_v22 = vmin.f32 %v49_v21, 15.0 }
  0x9b   :  { %v51_v23 = vsub.f32 %v50_v22, %v45_v18 }
  0x9d   :  { %v52_v24 = vmul.f32 %v51_v23, %v37_v9 }
  0x9f   :  { %54 = vst.msk [vmem:[#allocation2] sm:$0xff] %vm53_vm1, %v52_v24 }
  0xa0   :  { %90 = shalt.err (!%p87_p4)
}
  0xa1   :  { %s91_s24 = scalar_lea.hbm %s158_s4, 128 }
  0xa2   :  { %p92_p5 = scmp.ne.s32.totalorder %s158_s4, %s91_s24  ;;  %p95_p6 = scmp.lt.u32.totalorder %s91_s24, %s158_s4 }
  0xa4   :  { %p97_p7 = pnand %p95_p6, %p92_p5 }
  0xa6   :  { %100 = shalt.err (!%p97_p7)
}
  0xa7   :  { %64 = dma.vmem_to_hbm [thread:$0]  %s62_s3, 128, %s158_s4, [#allocation3]  }
  0xa8   :  { %101 = dma.done.wait [#allocation3], 128  }
  0xa9   :  { %102 = vsyncadd [#allocation3], 4294967168 }
  0xaa   :  { %68 = vsyncpa [#allocation3], 1 }

</bundles_post_ra>
